<compile_context>
chip_gen: v7x
topology: tpu7x:2x2x1
jax: 0.10.0
libtpu: 0.0.40
codegen_flags: <defaults>
</compile_context>

<pallas_src>
import functools

import numpy as np
import jax
import jax.numpy as jnp
from jax.experimental import pallas as pl
from jax.experimental.pallas import tpu as pltpu


def _per_lane_terms(xs, ys, zs):
    """xs/ys/zs: (21, L) coordinate planes, lanes = batch. Returns (1, L) per-batch loss."""
    # d[j] = joint[j+1] - joint[j], j = 0..19. For finger f: bone_k = d[4f + k - 1].
    dx = xs[1:] - xs[:-1]                       # (20, L)
    dy = ys[1:] - ys[:-1]
    dz = zs[1:] - zs[:-1]
    # c[j] = cross(d[j+1], d[j]), j = 0..18:
    #   c[4f]   = cross(bone2, bone1) = rot_near_palm
    #   c[4f+1] = cross(bone3, bone2) = rot_near_middle
    #   c[4f+2] = cross(bone4, bone3) = rot_near_tip
    ax, ay, az = dx[1:], dy[1:], dz[1:]
    bx, by, bz = dx[:-1], dy[:-1], dz[:-1]
    cx = ay * bz - az * by                      # (19, L)
    cy = az * bx - ax * bz
    cz = ax * by - ay * bx

    # g[j] = c[j] . d[j+3]  (j=0..16): dot(rot_palm, bone4)   wanted at j = 4f
    g = cx[:17] * dx[3:] + cy[:17] * dy[3:] + cz[:17] * dz[3:]
    # h[j] = c[j] . d[j+2]  (j=0..17): dot(rot_middle, bone4) wanted at j = 4f+1
    h = cx[:18] * dx[2:] + cy[:18] * dy[2:] + cz[:18] * dz[2:]
    # p[j] = c[j] . c[j+1]  (j=0..17): vec_dot_2 at j = 4f, vec_dot_1 at j = 4f+1
    p = cx[:18] * cx[1:] + cy[:18] * cy[1:] + cz[:18] * cz[1:]

    L = xs.shape[-1]
    j17 = jax.lax.broadcasted_iota(jnp.int32, (17, L), 0) & 3
    j18 = jax.lax.broadcasted_iota(jnp.int32, (18, L), 0) & 3
    z17 = jnp.zeros_like(g)
    z18 = jnp.zeros_like(h)

    coplane = (jnp.where(j17 == 0, g, z17).sum(axis=0, keepdims=True)
               + jnp.where(j18 == 1, h, z18).sum(axis=0, keepdims=True))
    pen = jnp.where(jnp.logical_and(j18 <= 1, p < 0.0), p * p, z18)
    return coplane + pen.sum(axis=0, keepdims=True)            # (1, L)


def _joint_angle_loss_kernel(x_ref, out_ref):
    # x_ref: (3, 21, B) VMEM block; out_ref: (1, B) per-batch partial sums.
    out_ref[...] = _per_lane_terms(x_ref[0], x_ref[1], x_ref[2])


def _joint_angle_loss_tiled_kernel(x_ref, out_ref, *, batch):
    # x_ref: (3, 21, TB) lane tile; out_ref: (1, TB). Zero the padded lanes of partial tiles.
    per_lane = _per_lane_terms(x_ref[0], x_ref[1], x_ref[2])
    tb = out_ref.shape[-1]
    lane = jax.lax.broadcasted_iota(jnp.int32, (1, tb), 1)
    valid = pl.program_id(0) * tb + lane < batch
    out_ref[...] = jnp.where(valid, per_lane, jnp.zeros_like(per_lane))


def joint_angle_loss(pose23d_pred, *, lane_tile=512):
    """pose23d_pred: (B, 21, 3) [u, v, d] cam-coord joints. Returns the scalar loss."""
    B, J, C = pose23d_pred.shape
    assert J == 21
    # TODO(synk): the (B, 21, 2) branch of the reference is ill-defined (torch.cross needs
    # 3-vectors and `use_coplane_reg` is unbound there), so only the 3-D path is implemented.
    assert C == 3, "only the 3-D (coplane-reg) path is implemented"

    # Single fused slab, lanes = batch.
    # TODO(synk): fold this transpose into whatever produces pose23d_pred when possible.
    x = jnp.transpose(pose23d_pred.astype(jnp.float32), (2, 1, 0))   # (3, 21, B)

    if B <= lane_tile:
        # Whole problem is one block: no grid, one DMA, lane-dense per-batch partials out.
        partial = pl.pallas_call(
            _joint_angle_loss_kernel,
            out_shape=jax.ShapeDtypeStruct((1, B), jnp.float32),
            in_specs=[pl.BlockSpec(memory_space=pltpu.MemorySpace.VMEM)],
            out_specs=pl.BlockSpec(memory_space=pltpu.MemorySpace.VMEM),
        )(x)
        return jnp.sum(partial)

    # Large-B path: tile the batch (lane) axis; "parallel" lets v7x's 2 TCs share the work.
    nt = pl.cdiv(B, lane_tile)
    partial = pl.pallas_call(
        functools.partial(_joint_angle_loss_tiled_kernel, batch=B),
        out_shape=jax.ShapeDtypeStruct((1, nt * lane_tile), jnp.float32),
        grid=(nt,),
        in_specs=[pl.BlockSpec((3, 21, lane_tile), lambda i: (0, 0, i))],
        out_specs=pl.BlockSpec((1, lane_tile), lambda i: (0, i)),
        compiler_params=pltpu.CompilerParams(dimension_semantics=("parallel",)),
    )(x)
    return jnp.sum(partial)


def _joint_angle_loss_ref(pose):
    """Pure numpy re-implementation of the PyTorch forward pass."""
    pose = np.asarray(pose, dtype=np.float64)
    loss = 0.0
    for b in range(pose.shape[0]):
        for f in range(5):
            p = pose[b]
            bone1 = p[f * 4 + 1] - p[f * 4]
            bone2 = p[f * 4 + 2] - p[f * 4 + 1]
            bone3 = p[f * 4 + 3] - p[f * 4 + 2]
            bone4 = p[f * 4 + 4] - p[f * 4 + 3]
            rot_tip = np.cross(bone4, bone3)
            rot_mid = np.cross(bone3, bone2)
            rot_palm = np.cross(bone2, bone1)
            loss = loss + np.dot(rot_palm, bone4) + np.dot(rot_mid, bone4)
            vd1 = np.dot(rot_tip, rot_mid)
            vd2 = np.dot(rot_palm, rot_mid)
            if vd1 < 0:
                loss += vd1 ** 2
            if vd2 < 0:
                loss += vd2 ** 2
    return loss


if __name__ == "__main__":
    key = jax.random.PRNGKey(0)

    # Small-batch path (no grid, single block).
    B = 2
    pose = jax.random.normal(key, (B, 21, 3), dtype=jnp.float32)
    loss = jax.block_until_ready(joint_angle_loss(pose))
    np.testing.assert_allclose(float(loss), _joint_angle_loss_ref(np.asarray(pose)),
                               rtol=1e-4, atol=1e-4)

    # Batch-tiled path (parallel grid over lane tiles, including a masked partial tile).
    B_big = 300
    pose_big = jax.random.normal(jax.random.PRNGKey(1), (B_big, 21, 3), dtype=jnp.float32)
    loss_big = jax.block_until_ready(joint_angle_loss(pose_big, lane_tile=128))
    np.testing.assert_allclose(float(loss_big), _joint_angle_loss_ref(np.asarray(pose_big)),
                               rtol=1e-4, atol=1e-2)

    print("KERNEL_OK")
</pallas_src>

<mosaic_0001>
module attributes {stable_mosaic.version = 11 : i64} {
  func.func @_joint_angle_loss_kernel(%arg0: memref<3x21x2xf32, #tpu.memory_space<vmem>>, %arg1: memref<1x2xf32, #tpu.memory_space<vmem>>) attributes {dimension_semantics = [], scalar_prefetch = 0 : i64, scratch_operands = 0 : i64, tpu.core_type = #tpu.core_type<tc>} {
    %c0 = arith.constant 0 : index
    %c0_0 = arith.constant 0 : index
    %c0_1 = arith.constant 0 : index
    %0 = vector.load %arg0[%c0, %c0_0, %c0_1] : memref<3x21x2xf32, #tpu.memory_space<vmem>>, vector<1x21x2xf32>
    %1 = vector.shape_cast %0 : vector<1x21x2xf32> to vector<21x2xf32>
    %c1 = arith.constant 1 : index
    %c0_2 = arith.constant 0 : index
    %c0_3 = arith.constant 0 : index
    %2 = vector.load %arg0[%c1, %c0_2, %c0_3] : memref<3x21x2xf32, #tpu.memory_space<vmem>>, vector<1x21x2xf32>
    %3 = vector.shape_cast %2 : vector<1x21x2xf32> to vector<21x2xf32>
    %c2 = arith.constant 2 : index
    %c0_4 = arith.constant 0 : index
    %c0_5 = arith.constant 0 : index
    %4 = vector.load %arg0[%c2, %c0_4, %c0_5] : memref<3x21x2xf32, #tpu.memory_space<vmem>>, vector<1x21x2xf32>
    %5 = vector.shape_cast %4 : vector<1x21x2xf32> to vector<21x2xf32>
    %6 = vector.extract_strided_slice %1 {offsets = [1, 0], sizes = [20, 2], strides = [1, 1]} : vector<21x2xf32> to vector<20x2xf32>
    %7 = vector.extract_strided_slice %1 {offsets = [0, 0], sizes = [20, 2], strides = [1, 1]} : vector<21x2xf32> to vector<20x2xf32>
    %8 = arith.subf %6, %7 : vector<20x2xf32>
    %9 = vector.extract_strided_slice %3 {offsets = [1, 0], sizes = [20, 2], strides = [1, 1]} : vector<21x2xf32> to vector<20x2xf32>
    %10 = vector.extract_strided_slice %3 {offsets = [0, 0], sizes = [20, 2], strides = [1, 1]} : vector<21x2xf32> to vector<20x2xf32>
    %11 = arith.subf %9, %10 : vector<20x2xf32>
    %12 = vector.extract_strided_slice %5 {offsets = [1, 0], sizes = [20, 2], strides = [1, 1]} : vector<21x2xf32> to vector<20x2xf32>
    %13 = vector.extract_strided_slice %5 {offsets = [0, 0], sizes = [20, 2], strides = [1, 1]} : vector<21x2xf32> to vector<20x2xf32>
    %14 = arith.subf %12, %13 : vector<20x2xf32>
    %15 = vector.extract_strided_slice %8 {offsets = [1, 0], sizes = [19, 2], strides = [1, 1]} : vector<20x2xf32> to vector<19x2xf32>
    %16 = vector.extract_strided_slice %11 {offsets = [1, 0], sizes = [19, 2], strides = [1, 1]} : vector<20x2xf32> to vector<19x2xf32>
    %17 = vector.extract_strided_slice %14 {offsets = [1, 0], sizes = [19, 2], strides = [1, 1]} : vector<20x2xf32> to vector<19x2xf32>
    %18 = vector.extract_strided_slice %8 {offsets = [0, 0], sizes = [19, 2], strides = [1, 1]} : vector<20x2xf32> to vector<19x2xf32>
    %19 = vector.extract_strided_slice %11 {offsets = [0, 0], sizes = [19, 2], strides = [1, 1]} : vector<20x2xf32> to vector<19x2xf32>
    %20 = vector.extract_strided_slice %14 {offsets = [0, 0], sizes = [19, 2], strides = [1, 1]} : vector<20x2xf32> to vector<19x2xf32>
    %21 = arith.mulf %16, %20 : vector<19x2xf32>
    %22 = arith.mulf %17, %19 : vector<19x2xf32>
    %23 = arith.subf %21, %22 : vector<19x2xf32>
    %24 = arith.mulf %17, %18 : vector<19x2xf32>
    %25 = arith.mulf %15, %20 : vector<19x2xf32>
    %26 = arith.subf %24, %25 : vector<19x2xf32>
    %27 = arith.mulf %15, %19 : vector<19x2xf32>
    %28 = arith.mulf %16, %18 : vector<19x2xf32>
    %29 = arith.subf %27, %28 : vector<19x2xf32>
    %30 = vector.extract_strided_slice %23 {offsets = [0, 0], sizes = [17, 2], strides = [1, 1]} : vector<19x2xf32> to vector<17x2xf32>
    %31 = vector.extract_strided_slice %8 {offsets = [3, 0], sizes = [17, 2], strides = [1, 1]} : vector<20x2xf32> to vector<17x2xf32>
    %32 = arith.mulf %30, %31 : vector<17x2xf32>
    %33 = vector.extract_strided_slice %26 {offsets = [0, 0], sizes = [17, 2], strides = [1, 1]} : vector<19x2xf32> to vector<17x2xf32>
    %34 = vector.extract_strided_slice %11 {offsets = [3, 0], sizes = [17, 2], strides = [1, 1]} : vector<20x2xf32> to vector<17x2xf32>
    %35 = arith.mulf %33, %34 : vector<17x2xf32>
    %36 = arith.addf %32, %35 : vector<17x2xf32>
    %37 = vector.extract_strided_slice %29 {offsets = [0, 0], sizes = [17, 2], strides = [1, 1]} : vector<19x2xf32> to vector<17x2xf32>
    %38 = vector.extract_strided_slice %14 {offsets = [3, 0], sizes = [17, 2], strides = [1, 1]} : vector<20x2xf32> to vector<17x2xf32>
    %39 = arith.mulf %37, %38 : vector<17x2xf32>
    %40 = arith.addf %36, %39 : vector<17x2xf32>
    %41 = vector.extract_strided_slice %23 {offsets = [0, 0], sizes = [18, 2], strides = [1, 1]} : vector<19x2xf32> to vector<18x2xf32>
    %42 = vector.extract_strided_slice %8 {offsets = [2, 0], sizes = [18, 2], strides = [1, 1]} : vector<20x2xf32> to vector<18x2xf32>
    %43 = arith.mulf %41, %42 : vector<18x2xf32>
    %44 = vector.extract_strided_slice %26 {offsets = [0, 0], sizes = [18, 2], strides = [1, 1]} : vector<19x2xf32> to vector<18x2xf32>
    %45 = vector.extract_strided_slice %11 {offsets = [2, 0], sizes = [18, 2], strides = [1, 1]} : vector<20x2xf32> to vector<18x2xf32>
    %46 = arith.mulf %44, %45 : vector<18x2xf32>
    %47 = arith.addf %43, %46 : vector<18x2xf32>
    %48 = vector.extract_strided_slice %29 {offsets = [0, 0], sizes = [18, 2], strides = [1, 1]} : vector<19x2xf32> to vector<18x2xf32>
    %49 = vector.extract_strided_slice %14 {offsets = [2, 0], sizes = [18, 2], strides = [1, 1]} : vector<20x2xf32> to vector<18x2xf32>
    %50 = arith.mulf %48, %49 : vector<18x2xf32>
    %51 = arith.addf %47, %50 : vector<18x2xf32>
    %52 = vector.extract_strided_slice %23 {offsets = [0, 0], sizes = [18, 2], strides = [1, 1]} : vector<19x2xf32> to vector<18x2xf32>
    %53 = vector.extract_strided_slice %23 {offsets = [1, 0], sizes = [18, 2], strides = [1, 1]} : vector<19x2xf32> to vector<18x2xf32>
    %54 = arith.mulf %52, %53 : vector<18x2xf32>
    %55 = vector.extract_strided_slice %26 {offsets = [0, 0], sizes = [18, 2], strides = [1, 1]} : vector<19x2xf32> to vector<18x2xf32>
    %56 = vector.extract_strided_slice %26 {offsets = [1, 0], sizes = [18, 2], strides = [1, 1]} : vector<19x2xf32> to vector<18x2xf32>
    %57 = arith.mulf %55, %56 : vector<18x2xf32>
    %58 = arith.addf %54, %57 : vector<18x2xf32>
    %59 = vector.extract_strided_slice %29 {offsets = [0, 0], sizes = [18, 2], strides = [1, 1]} : vector<19x2xf32> to vector<18x2xf32>
    %60 = vector.extract_strided_slice %29 {offsets = [1, 0], sizes = [18, 2], strides = [1, 1]} : vector<19x2xf32> to vector<18x2xf32>
    %61 = arith.mulf %59, %60 : vector<18x2xf32>
    %62 = arith.addf %58, %61 : vector<18x2xf32>
    %63 = tpu.iota {dimensions = array<i32: 0>} : vector<17x2xi32>
    %c3_i32 = arith.constant 3 : i32
    %64 = vector.broadcast %c3_i32 : i32 to vector<17x2xi32>
    %65 = arith.andi %63, %64 : vector<17x2xi32>
    %66 = tpu.iota {dimensions = array<i32: 0>} : vector<18x2xi32>
    %c3_i32_6 = arith.constant 3 : i32
    %67 = vector.broadcast %c3_i32_6 : i32 to vector<18x2xi32>
    %68 = arith.andi %66, %67 : vector<18x2xi32>
    %cst = arith.constant 0.000000e+00 : f32
    %69 = vector.broadcast %cst : f32 to vector<17x2xf32>
    %cst_7 = arith.constant 0.000000e+00 : f32
    %70 = vector.broadcast %cst_7 : f32 to vector<18x2xf32>
    %c0_i32 = arith.constant 0 : i32
    %71 = vector.broadcast %c0_i32 : i32 to vector<17x2xi32>
    %72 = arith.cmpi eq, %65, %71 : vector<17x2xi32>
    %73 = arith.select %72, %40, %69 : vector<17x2xi1>, vector<17x2xf32>
    %cst_8 = arith.constant dense<0.000000e+00> : vector<2xf32>
    %74 = vector.multi_reduction <add>, %73, %cst_8 [0] : vector<17x2xf32> to vector<2xf32>
    %75 = vector.shape_cast %74 : vector<2xf32> to vector<1x2xf32>
    %c1_i32 = arith.constant 1 : i32
    %76 = vector.broadcast %c1_i32 : i32 to vector<18x2xi32>
    %77 = arith.cmpi eq, %68, %76 : vector<18x2xi32>
    %78 = arith.select %77, %51, %70 : vector<18x2xi1>, vector<18x2xf32>
    %cst_9 = arith.constant dense<0.000000e+00> : vector<2xf32>
    %79 = vector.multi_reduction <add>, %78, %cst_9 [0] : vector<18x2xf32> to vector<2xf32>
    %80 = vector.shape_cast %79 : vector<2xf32> to vector<1x2xf32>
    %81 = arith.addf %75, %80 : vector<1x2xf32>
    %c1_i32_10 = arith.constant 1 : i32
    %82 = vector.broadcast %c1_i32_10 : i32 to vector<18x2xi32>
    %83 = arith.cmpi sle, %68, %82 : vector<18x2xi32>
    %cst_11 = arith.constant 0.000000e+00 : f32
    %84 = vector.broadcast %cst_11 : f32 to vector<18x2xf32>
    %85 = arith.cmpf olt, %62, %84 : vector<18x2xf32>
    %86 = arith.andi %83, %85 : vector<18x2xi1>
    %87 = arith.mulf %62, %62 : vector<18x2xf32>
    %88 = arith.select %86, %87, %70 : vector<18x2xi1>, vector<18x2xf32>
    %cst_12 = arith.constant dense<0.000000e+00> : vector<2xf32>
    %89 = vector.multi_reduction <add>, %88, %cst_12 [0] : vector<18x2xf32> to vector<2xf32>
    %90 = vector.shape_cast %89 : vector<2xf32> to vector<1x2xf32>
    %91 = arith.addf %81, %90 : vector<1x2xf32>
    %c0_13 = arith.constant 0 : index
    %c0_14 = arith.constant 0 : index
    %92 = vector.load %arg1[%c0_13, %c0_14] : memref<1x2xf32, #tpu.memory_space<vmem>>, vector<1x2xf32>
    tpu.vector_store %arg1[%c0_13, %c0_14], %91 {strides = array<i32>} : memref<1x2xf32, #tpu.memory_space<vmem>>, vector<1x2xf32>,
    return
  }
}

</mosaic_0001>

<bundles_post_ra>
// kernel: tpu_custom_call.1
= control target key start
LH: loop header
LB: loop body
LE: loop exit
PB: predicated region body
PF: predicated region fallthrough
CT: control target
= control target key end

     0   :  { %6 = vsyncpa [#allocation3], 0  ;;  %vm23_vm0 = vcmask 1040384   ;;  %vm123_vm1 = vcmask 1045504   ;;  %v251_v40 = vlaneseq  ;;  %vm163_vm2 = vcmask 1046528   ;;  %s658_s0 = inlined_call_operand.vmem [shape: f32[3,21,2], index: 0, kind: input, shape index: {}]   ;;  %s659_s1 = inlined_call_operand.hbm [shape: f32[1,2], index: 1, kind: output, shape index: {}]  }
   0x1   :  { %v9_v0 = vld [vmem:[%s658_s0] sm:$0xff]  ;;  %v10_v1 = vld [vmem:[%s658_s0 + $0x8] sm:$0xff]  ;;  %v11_v2 = vld [vmem:[%s658_s0 + $0x10] sm:$0x1f]  ;;  %vm275_vm5 = vcmask 15360   ;;  %vm279_vm7 = vcmask 8192  }
   0x2   :  { %v382_v3 = vld [vmem:[%s658_s0 + $0x18] sm:$0xff]  ;;  %v383_v4 = vld [vmem:[%s658_s0 + $0x20] sm:$0xff]  ;;  %v24_v5 = vrot.slane %v9_v0, 7  ;;  %v25_v6 = vrot.slane %v10_v1, 7  ;;  %v384_v7 = vld [vmem:[%s658_s0 + $0x28] sm:$0x1f] }
   0x3   :  { %v385_v8 = vld [vmem:[%s658_s0 + $0x30] sm:$0xff]  ;;  %v386_v9 = vld [vmem:[%s658_s0 + $0x38] sm:$0xff]  ;;  %v27_v10 = vrot.slane %v11_v2, 7  ;;  %v38_v11 = vrot.slane %v382_v3, 7  ;;  %v387_v12 = vld [vmem:[%s658_s0 + $0x40] sm:$0x1f] }
   0x4   :  { %v26_v13 = vsel %vm23_vm0, %v24_v5, %v25_v6  ;;  %v454_v14 = vsub.f32 %v9_v0, %v24_v5  ;;  %v39_v15 = vrot.slane %v383_v4, 7  ;;  %v41_v16 = vrot.slane %v384_v7, 7  ;;  %s415_s0 = smov [#allocation2]  }
   0x5   :  { %v28_v17 = vsel %vm23_vm0, %v25_v6, %v27_v10  ;;  %v457_v18 = vsub.f32 %v10_v1, %v26_v13  ;;  %v459_v19 = vsub.f32 %v382_v3, %v38_v11  ;;  %v52_v20 = vrot.slane %v385_v8, 7  ;;  %s374_s24 = sshll.u32 %s415_s0, 4  ;;  %s375_s24 = int_to_ptr.vmem [resolvable:$true] %s374_s24 }
   0x6   :  { %v461_v21 = vsub.f32 %v11_v2, %v28_v17  ;;  %v40_v22 = vsel %vm23_vm0, %v38_v11, %v39_v15  ;;  %v42_v23 = vsel %vm23_vm0, %v39_v15, %v41_v16  ;;  %v53_v24 = vrot.slane %v386_v9, 7  ;;  %s390_s25 = scalar_lea.vmem %s375_s24, 16  ;;  %s394_s26 = scalar_lea.vmem %s375_s24, 32 }
   0x7   :  { %v465_v25 = vsub.f32 %v383_v4, %v40_v22  ;;  %v467_v26 = vsub.f32 %v384_v7, %v42_v23  ;;  %v55_v27 = vrot.slane %v387_v12, 7  ;;  %v469_v28 = vsub.f32 %v385_v8, %v52_v20  ;;  %p391_p0 = scmp.ne.s32.totalorder %s375_s24, %s390_s25  ;;  %p395_p1 = scmp.lt.s32.totalorder %s375_s24, %s375_s24 }
   0x8   :  { %v54_v29 = vsel %vm23_vm0, %v52_v20, %v53_v24  ;;  %v80_v30 = vrot.slane %v459_v19, 7  ;;  %v97_v31 = vrot.slane %v454_v14, 7  ;;  %v98_v32 = vrot.slane %v457_v18, 7  ;;  %p396_p2 = scmp.lt.s32.totalorder %s394_s26, %s390_s25 }
   0x9   :  { %v56_v33 = vsel %vm23_vm0, %v53_v24, %v55_v27  ;;  %v476_v34 = vsub.f32 %v386_v9, %v54_v29  ;;  %v66_v35 = vrot.slane %v469_v28, 7  ;;  %v81_v36 = vrot.slane %v465_v25, 7 }
   0xa   :  { %v480_v37 = vsub.f32 %v387_v12, %v56_v33  ;;  %v83_v38 = vrot.slane %v467_v26, 7  ;;  %v88_v39 = vmul.f32 %v80_v30, %v469_v28  ;;  %v99_v43 = vsel %vm23_vm0, %v97_v31, %v98_v32  ;;  %p397_p3 = por %p396_p2, %p395_p1 }
   0xb   :  { %v67_v41 = vrot.slane %v476_v34, 7  ;;  %v82_v42 = vsel %vm23_vm0, %v80_v30, %v81_v36  ;;  %v100_v44 = vrot.slane %v461_v21, 7  ;;  %v74_v46 = vmul.f32 %v66_v35, %v459_v19 }
   0xc   :  { %v69_v45 = vrot.slane %v480_v37, 7  ;;  %v84_v47 = vsel %vm23_vm0, %v81_v36, %v83_v38  ;;  %v89_v48 = vmul.f32 %v82_v42, %v476_v34  ;;  %v105_v52 = vmul.f32 %v97_v31, %v469_v28  ;;  %p398_p4 = pnand %p397_p3, %p391_p0 }
   0xd   :  { %v68_v49 = vsel %vm23_vm0, %v66_v35, %v67_v41  ;;  %v90_v50 = vmul.f32 %v84_v47, %v480_v37  ;;  %v101_v51 = vsel %vm23_vm0, %v98_v32, %v100_v44  ;;  %v106_v55 = vmul.f32 %v99_v43, %v476_v34 }
   0xe   :  { %v70_v53 = vsel %vm23_vm0, %v67_v41, %v69_v45  ;;  %v75_v54 = vmul.f32 %v68_v49, %v465_v25  ;;  %v107_v56 = vmul.f32 %v101_v51, %v480_v37  ;;  %v108_v58 = vmul.f32 %v66_v35, %v454_v14 }
   0xf   :  { %v76_v57 = vmul.f32 %v70_v53, %v467_v26  ;;  %v109_v59 = vmul.f32 %v68_v49, %v457_v18  ;;  %v110_v60 = vmul.f32 %v70_v53, %v461_v21  ;;  %v504_v61 = vsub.f32 %v74_v46, %v88_v39 }
  0x10   :  { %v506_v62 = vsub.f32 %v75_v54, %v89_v48  ;;  %v114_v63 = vmul.f32 %v80_v30, %v454_v14  ;;  %v115_v0 = vmul.f32 %v82_v42, %v457_v18  ;;  %v512_v2 = vsub.f32 %v105_v52, %v108_v58 }
  0x11   :  { %v510_v1 = vsub.f32 %v76_v57, %v90_v50  ;;  %v514_v3 = vsub.f32 %v106_v55, %v109_v59  ;;  %v116_v4 = vmul.f32 %v84_v47, %v461_v21  ;;  %v517_v5 = vsub.f32 %v107_v56, %v110_v60 }
  0x12   :  { %v117_v6 = vmul.f32 %v97_v31, %v459_v19  ;;  %v118_v7 = vmul.f32 %v99_v43, %v465_v25  ;;  %v124_v8 = vrot.slane %v454_v14, 2  ;;  %v125_v9 = vrot.slane %v457_v18, 2 }
  0x13   :  { %v127_v10 = vrot.slane %v461_v21, 2  ;;  %v135_v11 = vrot.slane %v459_v19, 2  ;;  %v136_v12 = vrot.slane %v465_v25, 2  ;;  %v119_v13 = vmul.f32 %v101_v51, %v467_v26 }
  0x14   :  { %v527_v15 = vsub.f32 %v114_v63, %v117_v6  ;;  %v529_v16 = vsub.f32 %v115_v0, %v118_v7  ;;  %v138_v17 = vrot.slane %v467_v26, 2  ;;  %v126_v20 = vsel %vm123_vm1, %v124_v8, %v125_v9 }
  0x15   :  { %v128_v22 = vsel %vm123_vm1, %v125_v9, %v127_v10  ;;  %v134_v23 = vmul.f32 %v127_v10, %v510_v1  ;;  %v137_v24 = vsel %vm123_vm1, %v135_v11, %v136_v12  ;;  %v132_v27 = vmul.f32 %v126_v20, %v504_v61 }
  0x16   :  { %v133_v29 = vmul.f32 %v128_v22, %v506_v62  ;;  %v139_v30 = vsel %vm123_vm1, %v136_v12, %v138_v17  ;;  %v143_v31 = vmul.f32 %v137_v24, %v512_v2  ;;  %v145_v33 = vmul.f32 %v138_v17, %v517_v5 }
  0x17   :  { %v144_v32 = vmul.f32 %v139_v30, %v514_v3  ;;  %v149_v35 = vrot.slane %v469_v28, 2  ;;  %v150_v36 = vrot.slane %v476_v34, 2  ;;  %v544_v38 = vsub.f32 %v116_v4, %v119_v13 }
  0x18   :  { %v146_v39 = vadd.f32 %v143_v31, %v132_v27  ;;  %v152_v41 = vrot.slane %v480_v37, 2  ;;  %v164_v42 = vrot.slane %v454_v14, 1  ;;  %v148_v43 = vadd.f32 %v145_v33, %v134_v23 }
  0x19   :  { %v151_v44 = vsel %vm123_vm1, %v149_v35, %v150_v36  ;;  %v165_v45 = vrot.slane %v457_v18, 1  ;;  %v167_v49 = vrot.slane %v461_v21, 1  ;;  %v147_v50 = vadd.f32 %v144_v32, %v133_v29 }
  0x1a   :  { %v153_v46 = vsel %vm123_vm1, %v150_v36, %v152_v41  ;;  %v157_v47 = vmul.f32 %v151_v44, %v527_v15  ;;  %v159_v48 = vmul.f32 %v152_v41, %v544_v38  ;;  %v175_v52 = vrot.slane %v459_v19, 1 }
  0x1b   :  { %v166_v51 = vsel %vm163_vm2, %v164_v42, %v165_v45  ;;  %v176_v14 = vrot.slane %v465_v25, 1  ;;  %v158_v53 = vmul.f32 %v153_v46, %v529_v16  ;;  %v168_v18 = vsel %vm163_vm2, %v165_v45, %v167_v49 }
  0x1c   :  { %v558_v54 = vadd.f32 %v157_v47, %v146_v39  ;;  %v172_v55 = vmul.f32 %v166_v51, %v504_v61  ;;  %v562_v56 = vadd.f32 %v159_v48, %v148_v43  ;;  %v173_v57 = vmul.f32 %v168_v18, %v506_v62 }
  0x1d   :  { %v174_v21 = vmul.f32 %v167_v49, %v510_v1  ;;  %v177_v58 = vsel %vm163_vm2, %v175_v52, %v176_v14  ;;  %v178_v19 = vrot.slane %v467_v26, 1  ;;  %v189_v59 = vrot.slane %v469_v28, 1 }
  0x1e   :  { %v183_v25 = vmul.f32 %v177_v58, %v512_v2  ;;  %v190_v60 = vrot.slane %v476_v34, 1  ;;  %v192_v63 = vrot.slane %v480_v37, 1  ;;  %v206_v0 = vrot.slane %v504_v61, 1 }
  0x1f   :  { %v207_v4 = vrot.slane %v506_v62, 1  ;;  %v209_v6 = vrot.slane %v510_v1, 1  ;;  %v179_v7 = vsel %vm163_vm2, %v176_v14, %v178_v19  ;;  %v185_v8 = vmul.f32 %v178_v19, %v517_v5 }
  0x20   :  { %v186_v9 = vadd.f32 %v183_v25, %v172_v55  ;;  %v191_v26 = vsel %vm163_vm2, %v189_v59, %v190_v60  ;;  %v184_v10 = vmul.f32 %v179_v7, %v514_v3  ;;  %v193_v28 = vsel %vm163_vm2, %v190_v60, %v192_v63 }
  0x21   :  { %v197_v34 = vmul.f32 %v191_v26, %v527_v15  ;;  %v199_v37 = vmul.f32 %v192_v63, %v544_v38  ;;  %v161_v11 = vadd.f32 %v158_v53, %v147_v50  ;;  %v188_v12 = vadd.f32 %v185_v8, %v174_v21 }
  0x22   :  { %v208_v13 = vsel %vm163_vm2, %v206_v0, %v207_v4  ;;  %v210_v17 = vsel %vm163_vm2, %v207_v4, %v209_v6  ;;  %v187_v20 = vadd.f32 %v184_v10, %v173_v57  ;;  %v198_v22 = vmul.f32 %v193_v28, %v529_v16 }
  0x23   :  { %v200_v23 = vadd.f32 %v197_v34, %v186_v9  ;;  %v214_v24 = vmul.f32 %v208_v13, %v504_v61  ;;  %v202_v27 = vadd.f32 %v199_v37, %v188_v12  ;;  %v215_v29 = vmul.f32 %v210_v17, %v506_v62 }
  0x24   :  { %v220_v30 = vrot.slane %v512_v2, 1  ;;  %v221_v31 = vrot.slane %v514_v3, 1  ;;  %v216_v32 = vmul.f32 %v209_v6, %v510_v1  ;;  %v223_v33 = vrot.slane %v517_v5, 1 }
  0x25   :  { %v237_v35 = vrot.slane %v527_v15, 1  ;;  %v238_v36 = vrot.slane %v529_v16, 1  ;;  %v240_v41 = vrot.slane %v544_v38, 1  ;;  %v252_v61 = vshrl.u32 %v251_v40, 7 }
  0x26   :  { %v222_v39 = vsel %vm163_vm2, %v220_v30, %v221_v31  ;;  %v264_v62 = vrot.slane %v558_v54, 2  ;;  %v224_v42 = vsel %vm163_vm2, %v221_v31, %v223_v33  ;;  %v230_v1 = vmul.f32 %v223_v33, %v517_v5 }
  0x27   :  { %v228_v43 = vmul.f32 %v222_v39, %v512_v2  ;;  %v239_v44 = vsel %vm163_vm2, %v237_v35, %v238_v36  ;;  %v229_v45 = vmul.f32 %v224_v42, %v514_v3  ;;  %v241_v46 = vsel %vm163_vm2, %v238_v36, %v240_v41 }
  0x28   :  { %v245_v47 = vmul.f32 %v239_v44, %v527_v15  ;;  %v247_v48 = vmul.f32 %v240_v41, %v544_v38  ;;  %v201_v49 = vadd.f32 %v198_v22, %v187_v20  ;;  %v233_v50 = vadd.f32 %v230_v1, %v216_v32 }
  0x29   :  { %v231_v40 = vadd.f32 %v228_v43, %v214_v24  ;;  %v253_v51 = vadd.s32 8, %v252_v61  ;;  %v246_v52 = vmul.f32 %v241_v46, %v529_v16  ;;  %v254_v14 = vadd.s32 16, %v252_v61 }
  0x2a   :  { %v606_v2 = vand.u32 3, %v252_v61  ;;  %v265_v5 = vrot.slane %v161_v11, 2  ;;  %v232_v53 = vadd.f32 %v229_v45, %v215_v29  ;;  %v267_v3 = vrot.slane %v562_v56, 2 }
  0x2b   :  { %v248_v54 = vadd.f32 %v245_v47, %v231_v40  ;;  %v608_v18 = vand.u32 3, %v253_v51  ;;  %v250_v55 = vadd.f32 %v247_v48, %v233_v50  ;;  %v611_v15 = vand.u32 3, %v254_v14 }
  0x2c   :  { %vm258_vm3 = vcmp.eq.s32.totalorder %v606_v2, 0  ;;  %v266_v38 = vsel %vm123_vm1, %v264_v62, %v265_v5  ;;  %v268_v16 = vsel %vm123_vm1, %v265_v5, %v267_v3  ;;  %v249_v56 = vadd.f32 %v246_v52, %v232_v53 }
  0x2d   :  { %vm259_vm4 = vcmp.eq.s32.totalorder %v608_v18, 0  ;;  %v272_v57 = vsel %vm258_vm3, %v266_v38, 0.0  ;;  %vm260_vm6 = vcmp.eq.s32.totalorder %v611_v15, 0  ;;  %vm288_vm8 = vcmp.eq.s32.totalorder %v606_v2, 1 }
  0x2e   :  { %v273_v21 = vsel %vm259_vm4, %v268_v16, 0.0  ;;  %v276_v58 = vsel %vm275_vm5, %v272_v57, 0.0  ;;  %v274_v19 = vsel %vm260_vm6, %v267_v3, 0.0  ;;  %vm290_vm9 = vcmp.eq.s32.totalorder %v611_v15, 1 }
  0x2f   :  { %v277_v25 = vsel %vm275_vm5, %v273_v21, 0.0  ;;  %v280_v60 = vsel %vm279_vm7, %v274_v19, 0.0  ;;  %v294_v63 = vrot.slane %v200_v23, 2  ;;  %vm289_vm10 = vcmp.eq.s32.totalorder %v608_v18, 1 }
  0x30   :  { %v278_v59 = vadd.f32 %v277_v25, %v276_v58  ;;  %v295_v0 = vrot.slane %v201_v49, 2  ;;  %v297_v4 = vrot.slane %v202_v27, 2  ;;  %vm308_vm11 = vcmask 9216  }
  0x31   :  { %vm321_vm12 = vcmp.lt.f32.partialorder %v248_v54, 0.0  ;;  %vm322_vm13 = vcmp.lt.f32.partialorder %v249_v56, 0.0  ;;  %vm323_vm14 = vcmp.lt.f32.partialorder %v250_v55, 0.0  ;;  %vm318_vm15 = vcmp.le.s32.totalorder %v606_v2, 1 }
  0x32   :  { %v281_v6 = vadd.f32 %v280_v60, %v278_v59  ;;  %v296_v7 = vsel %vm123_vm1, %v294_v63, %v295_v0  ;;  %v298_v8 = vsel %vm123_vm1, %v295_v0, %v297_v4  ;;  %v304_v9 = vsel %vm290_vm9, %v297_v4, 0.0 }
  0x33   :  { %v302_v10 = vsel %vm288_vm8, %v296_v7, 0.0  ;;  %v303_v28 = vsel %vm289_vm10, %v298_v8, 0.0  ;;  %v309_v34 = vsel %vm308_vm11, %v304_v9, 0.0  ;;  %v414_v13 = vmov 0  }
  0x34   :  { %v282_v26 = vrot.slane %v281_v6, 4  ;;  %v305_v37 = vsel %vm275_vm5, %v302_v10, 0.0  ;;  %v306_v11 = vsel %vm275_vm5, %v303_v28, 0.0  ;;  %v324_v17 = vsel %vm321_vm12, 1, %v414_v13 }
  0x35   :  { %v307_v12 = vadd.f32 %v306_v11, %v305_v37  ;;  %v325_v20 = vsel %vm322_vm13, 1, %v414_v13  ;;  %v326_v22 = vsel %vm323_vm14, 1, %v414_v13  ;;  %v327_v23 = vrot.slane %v324_v17, 2 }
  0x36   :  { %v328_v24 = vrot.slane %v325_v20, 2  ;;  %v338_v27 = vmul.f32 %v248_v54, %v248_v54  ;;  %v283_v29 = vadd.f32 %v282_v26, %v281_v6  ;;  %v330_v31 = vrot.slane %v326_v22, 2 }
  0x37   :  { %v310_v30 = vadd.f32 %v309_v34, %v307_v12  ;;  %v339_v32 = vmul.f32 %v249_v56, %v249_v56  ;;  %vm319_vm0 = vcmp.le.s32.totalorder %v608_v18, 1  ;;  %v340_v35 = vmul.f32 %v250_v55, %v250_v55 }
  0x38   :  { %v329_v33 = vsel %vm123_vm1, %v327_v23, %v328_v24  ;;  %v344_v36 = vrot.slane %v338_v27, 2  ;;  %vm320_vm2 = vcmp.le.s32.totalorder %v611_v15, 1  ;;  %v331_v41 = vsel %vm123_vm1, %v328_v24, %v330_v31 }
  0x39   :  { %v311_v39 = vrot.slane %v310_v30, 4  ;;  %vm332_vm3 = vcmp.ne.s32.totalorder %v329_v33, 0  ;;  %vm333_vm4 = vcmp.ne.s32.totalorder %v331_v41, 0  ;;  %vm334_vm6 = vcmp.ne.s32.totalorder %v330_v31, 0 }
  0x3a   :  { %vm335_vm8 = vmand %vm318_vm15, %vm332_vm3  ;;  %v345_v61 = vrot.slane %v339_v32, 2  ;;  %v347_v62 = vrot.slane %v340_v35, 2  ;;  %v284_v42 = vrot.slane %v283_v29, 2 }
  0x3b   :  { %v312_v43 = vadd.f32 %v311_v39, %v310_v30  ;;  %vm336_vm9 = vmand %vm319_vm0, %vm333_vm4 }
  0x3c   :  { %vm337_vm10 = vmand %vm320_vm2, %vm334_vm6  ;;  %v346_v1 = vsel %vm123_vm1, %v344_v36, %v345_v61  ;;  %v348_v44 = vsel %vm123_vm1, %v345_v61, %v347_v62  ;;  %v285_v50 = vadd.f32 %v284_v42, %v283_v29 }
  0x3d   :  { %v313_v45 = vrot.slane %v312_v43, 2  ;;  %v352_v46 = vsel %vm335_vm8, %v346_v1, 0.0  ;;  %v353_v47 = vsel %vm336_vm9, %v348_v44, 0.0  ;;  %v354_v48 = vsel %vm337_vm10, %v347_v62, 0.0 }
  0x3e   :  { %v355_v49 = vsel %vm275_vm5, %v352_v46, 0.0  ;;  %v356_v40 = vsel %vm275_vm5, %v353_v47, 0.0  ;;  %v358_v14 = vsel %vm308_vm11, %v354_v48, 0.0  ;;  %v286_v5 = vrot.slane %v285_v50, 1 }
  0x3f   :  { %v314_v51 = vadd.f32 %v313_v45, %v312_v43  ;;  %v357_v52 = vadd.f32 %v356_v40, %v355_v49 }
  0x40   :  { %v287_v3 = vadd.f32 %v286_v5, %v285_v50 }
  0x41   :  { %v359_v2 = vadd.f32 %v358_v14, %v357_v52  ;;  %v315_v53 = vrot.slane %v314_v51, 1 }
  0x43   :  { %v360_v54 = vrot.slane %v359_v2, 4  ;;  %v316_v55 = vadd.f32 %v315_v53, %v314_v51 }
  0x45   :  { %v361_v18 = vadd.f32 %v360_v54, %v359_v2  ;;  %v317_v16 = vadd.f32 %v316_v55, %v287_v3 }
  0x47   :  { %v362_v15 = vrot.slane %v361_v18, 2 }
  0x49   :  { %v363_v38 = vadd.f32 %v362_v15, %v361_v18 }
  0x4b   :  { %v364_v57 = vrot.slane %v363_v38, 1 }
  0x4d   :  { %v365_v21 = vadd.f32 %v364_v57, %v363_v38 }
  0x4f   :  { %v366_v58 = vadd.f32 %v365_v21, %v317_v16 }
  0x51   :  { %367 = vst.msk [vmem:[#allocation2] sm:$0x1] %vm279_vm7, %v366_v58 }
  0x52   :  { %401 = shalt.err (!%p398_p4)
}
  0x53   :  { %s402_s29 = scalar_lea.hbm %s659_s1, 16 }
  0x54   :  { %p403_p5 = scmp.ne.s32.totalorder %s659_s1, %s402_s29  ;;  %p406_p6 = scmp.lt.u32.totalorder %s402_s29, %s659_s1 }
  0x56   :  { %p408_p7 = pnand %p406_p6, %p403_p5 }
  0x58   :  { %411 = shalt.err (!%p408_p7)
}
  0x59   :  { %377 = dma.vmem_to_hbm [thread:$0]  %s375_s24, 16, %s659_s1, [#allocation3]  }
  0x5a   :  { %412 = dma.done.wait [#allocation3], 16  }
  0x5b   :  { %413 = vsyncadd [#allocation3], 4294967280 }
  0x5c   :  { %381 = vsyncpa [#allocation3], 1 }

</bundles_post_ra>
